<compile_context>
chip_gen: v7x
topology: tpu7x:2x2x1
jax: 0.10.0
libtpu: 0.0.40
codegen_flags: <defaults>
</compile_context>

<pallas_src>
import jax
import jax.numpy as jnp
from jax.experimental import pallas as pl
from jax.experimental.pallas import tpu as pltpu


def _round_up(n: int, m: int) -> int:
    return ((n + m - 1) // m) * m


def linear_kernel(x_ref, w_ref, b_ref, o_ref):
    # x_ref: (tb, D_in)    -- streamed batch tile (real, unpadded width)
    # w_ref: (D_in, D_out) -- pre-transposed weight, VMEM-resident
    # b_ref: (1, D_out)    -- VMEM-resident
    # o_ref: (tb, D_out)
    acc = jnp.dot(x_ref[...], w_ref[...], preferred_element_type=jnp.float32)
    o_ref[...] = (acc + b_ref[...].astype(jnp.float32)).astype(o_ref.dtype)


def tabular_model_forward(x, weight, bias, *, block_b: int = 1024):
    """Equivalent of TabularModel.forward: x @ weight.T + bias.

    x:      (B, D_in)
    weight: (D_out, D_in)  native PyTorch nn.Linear layout
    bias:   (D_out,)
    """
    B, D_in = x.shape
    D_out, D_in_w = weight.shape
    assert D_in == D_in_w, "weight/input feature mismatch"
    block_b = max(8, _round_up(block_b, 8))  # keep sublane divisibility

    w_t = jnp.transpose(weight)      # (D_in, D_out): one-time, tiny
    bias2d = bias.reshape(1, D_out)

    itemsize = jnp.dtype(x.dtype).itemsize
    cost = pl.CostEstimate(
        flops=2 * B * D_in * D_out,
        transcendentals=0,
        bytes_accessed=(x.size + w_t.size + bias2d.size + B * D_out) * itemsize,
    )

    # --- Fast path: whole batch fits one tile -> single shot, no pad, no slice.
    if B <= block_b:
        return pl.pallas_call(
            linear_kernel,
            out_shape=jax.ShapeDtypeStruct((B, D_out), x.dtype),
            grid_spec=pl.GridSpec(
                grid=(1,),
                in_specs=[
                    pl.BlockSpec((B, D_in), lambda i: (0, 0)),
                    pl.BlockSpec((D_in, D_out), lambda i: (0, 0)),
                    pl.BlockSpec((1, D_out), lambda i: (0, 0)),
                ],
                out_specs=pl.BlockSpec((B, D_out), lambda i: (0, 0)),
            ),
            compiler_params=pltpu.CompilerParams(
                dimension_semantics=("arbitrary",),
            ),
            cost_estimate=cost,
        )(x, w_t, bias2d)

    # --- Multi-step path: tile the batch; tb chosen to minimize row padding.
    n_steps = pl.cdiv(B, block_b)
    tb = _round_up(pl.cdiv(B, n_steps), 8)
    b_p = _round_up(B, tb)
    x_in = x if b_p == B else jnp.zeros((b_p, D_in), x.dtype).at[:B].set(x)

    out = pl.pallas_call(
        linear_kernel,
        out_shape=jax.ShapeDtypeStruct((b_p, D_out), x.dtype),
        grid_spec=pl.GridSpec(
            grid=(b_p // tb,),
            in_specs=[
                pl.BlockSpec((tb, D_in), lambda i: (i, 0)),      # x tiles stream
                pl.BlockSpec((D_in, D_out), lambda i: (0, 0)),   # weight resident
                pl.BlockSpec((1, D_out), lambda i: (0, 0)),      # bias resident
            ],
            out_specs=pl.BlockSpec((tb, D_out), lambda i: (i, 0)),
        ),
        compiler_params=pltpu.CompilerParams(
            dimension_semantics=("parallel",),   # batch tiles across TCs (v7x)
        ),
        cost_estimate=cost,
    )(x_in, w_t, bias2d)

    return out if b_p == B else out[:B]


if __name__ == "__main__":
    # Iris-like dimensions: 4 input features, 3 output classes.
    input_size = 4
    output_size = 3

    key = jax.random.PRNGKey(0)
    kw, kb, kx1, kx2, kx3 = jax.random.split(key, 5)

    # Deterministic parameter init (nn.Linear-style uniform bound).
    bound = 1.0 / (input_size ** 0.5)
    weight = jax.random.uniform(
        kw, (output_size, input_size), jnp.float32, -bound, bound
    )
    bias = jax.random.uniform(kb, (output_size,), jnp.float32, -bound, bound)

    # Small batch -> fast path (single full-array block, no padding).
    x1 = jax.random.normal(kx1, (8, input_size), dtype=jnp.float32)
    out1 = tabular_model_forward(x1, weight, bias)
    jax.block_until_ready(out1)
    assert out1.shape == (8, output_size)
    assert jnp.allclose(out1, x1 @ weight.T + bias, atol=1e-5, rtol=1e-5)

    # Iris-sized batch (150, not a multiple of 8) -> still fast path.
    x2 = jax.random.normal(kx2, (150, input_size), dtype=jnp.float32)
    out2 = tabular_model_forward(x2, weight, bias)
    jax.block_until_ready(out2)
    assert out2.shape == (150, output_size)
    assert jnp.allclose(out2, x2 @ weight.T + bias, atol=1e-5, rtol=1e-5)

    # Larger batch -> multi-step batch grid (exercises tiling + row padding).
    x3 = jax.random.normal(kx3, (2500, input_size), dtype=jnp.float32)
    out3 = tabular_model_forward(x3, weight, bias)
    jax.block_until_ready(out3)
    assert out3.shape == (2500, output_size)
    assert jnp.allclose(out3, x3 @ weight.T + bias, atol=1e-5, rtol=1e-5)

    print("KERNEL_OK")
</pallas_src>

<mosaic_0001>
module attributes {stable_mosaic.version = 11 : i64} {
  func.func @linear_kernel(%arg0: i32, %arg1: memref<8x4xf32, #tpu.memory_space<vmem>>, %arg2: memref<4x3xf32, #tpu.memory_space<vmem>>, %arg3: memref<1x3xf32, #tpu.memory_space<vmem>>, %arg4: memref<8x3xf32, #tpu.memory_space<vmem>>) attributes {dimension_semantics = [#tpu.dimension_semantics<arbitrary>], iteration_bounds = array<i64: 1>, scalar_prefetch = 0 : i64, scratch_operands = 0 : i64, tpu.core_type = #tpu.core_type<tc>, window_params = [{pipeline_mode = #tpu.pipeline_mode<synchronous>, transform_indices = @transform_0, window_bounds = array<i64: 8, 4>}, {pipeline_mode = #tpu.pipeline_mode<synchronous>, transform_indices = @transform_1, window_bounds = array<i64: 4, 3>}, {pipeline_mode = #tpu.pipeline_mode<synchronous>, transform_indices = @transform_2, window_bounds = array<i64: 1, 3>}, {pipeline_mode = #tpu.pipeline_mode<synchronous>, transform_indices = @transform_3, window_bounds = array<i64: 8, 3>}]} {
    %c0 = arith.constant 0 : index
    %c0_0 = arith.constant 0 : index
    %0 = vector.load %arg1[%c0, %c0_0] : memref<8x4xf32, #tpu.memory_space<vmem>>, vector<8x4xf32>
    %c0_1 = arith.constant 0 : index
    %c0_2 = arith.constant 0 : index
    %1 = vector.load %arg2[%c0_1, %c0_2] : memref<4x3xf32, #tpu.memory_space<vmem>>, vector<4x3xf32>
    %cst = arith.constant dense<0.000000e+00> : vector<8x3xf32>
    %2 = tpu.matmul %0, %1, %cst {dimension_numbers = #tpu.dot_dimension_numbers<[1], [0], [0], [1], [0, 0, 1, 1], [], []>} : vector<8x4xf32>, vector<4x3xf32>, vector<8x3xf32> -> vector<8x3xf32>
    %c0_3 = arith.constant 0 : index
    %c0_4 = arith.constant 0 : index
    %3 = vector.load %arg3[%c0_3, %c0_4] : memref<1x3xf32, #tpu.memory_space<vmem>>, vector<1x3xf32>
    %4 = vector.broadcast %3 : vector<1x3xf32> to vector<8x3xf32>
    %5 = arith.addf %2, %4 : vector<8x3xf32>
    %c0_5 = arith.constant 0 : index
    %c0_6 = arith.constant 0 : index
    %6 = vector.load %arg4[%c0_5, %c0_6] : memref<8x3xf32, #tpu.memory_space<vmem>>, vector<8x3xf32>
    tpu.vector_store %arg4[%c0_5, %c0_6], %5 {strides = array<i32>} : memref<8x3xf32, #tpu.memory_space<vmem>>, vector<8x3xf32>,
    return
  }
  func.func @transform_0(%arg0: i32) -> (i32, i32) {
    %c0_i32 = arith.constant 0 : i32
    %c0_i32_0 = arith.constant 0 : i32
    %c0_i32_1 = arith.constant 0 : i32
    return %c0_i32, %c0_i32_0 : i32, i32
  }
  func.func @transform_1(%arg0: i32) -> (i32, i32) {
    %c0_i32 = arith.constant 0 : i32
    %c0_i32_0 = arith.constant 0 : i32
    %c0_i32_1 = arith.constant 0 : i32
    return %c0_i32, %c0_i32_0 : i32, i32
  }
  func.func @transform_2(%arg0: i32) -> (i32, i32) {
    %c0_i32 = arith.constant 0 : i32
    %c0_i32_0 = arith.constant 0 : i32
    %c0_i32_1 = arith.constant 0 : i32
    return %c0_i32, %c0_i32_0 : i32, i32
  }
  func.func @transform_3(%arg0: i32) -> (i32, i32) {
    %c0_i32 = arith.constant 0 : i32
    %c0_i32_0 = arith.constant 0 : i32
    %c0_i32_1 = arith.constant 0 : i32
    return %c0_i32, %c0_i32_0 : i32, i32
  }
}

</mosaic_0001>

<bundles_post_ra>
// kernel: tpu_custom_call.1
= control target key start
LH: loop header
LB: loop body
LE: loop exit
PB: predicated region body
PF: predicated region fallthrough
CT: control target
= control target key end

     0   :  { %vm27_vm0 = vcmask 1043456   ;;  %vm23_vm1 = vcmask 31744   ;;  %v119_v0 = vmov 0.0   ;;  %vm120_vm2 = vmmov 0   ;;  %s153_s1 = inlined_call_operand.vmem [shape: f32[4,3], index: 1, kind: input, shape index: {}]   ;;  %s154_s0 = inlined_call_operand.vmem [shape: f32[8,4], index: 0, kind: input, shape index: {}]   ;;  %s155_s2 = inlined_call_operand.vmem [shape: f32[1,3], index: 2, kind: input, shape index: {}]   ;;  %s156_s3 = inlined_call_operand.vmem [shape: f32[8,3], index: 3, kind: output, shape index: {}]  }
   0x1   :  { %112 = vmatprep.subr.mxu0 %v119_v0  ;;  %v15_v1 = vld [vmem:[%s153_s1] sm:$0xf]  ;;  %114 = vmatprep.mubr.msk.f32.mxu0 %vm120_vm2, %v119_v0  ;;  %vm101_vm3 = vcmask 23552  }
   0x2   :  { %v14_v2 = vld [vmem:[%s154_s0] sm:$0xff]  ;;  %113 = vmatpush3.msk.msra.mxu0 %vm27_vm0, %v15_v1 }
   0x3   :  { %115 = vmatmul.mubr.msk.f32.vlgmr.msra.gmra.mrb[0].mxu0 %vm23_vm1, %v14_v2  ;;  %v107_v3 = vld [vmem:[%s155_s2] ss:$0 sm:$0xff] }
  0xd6   :  { %v97_v4 = vpop.f32.mrb[0].mxu0 }
  0xd7   :  { %v98_v5 = vadd.f32 %v107_v3, %v97_v4  ;;  %v116_v6 = vpop.f32.mrb[1].mxu0 }
  0xd9   :  { %102 = vst.msk [vmem:[%s156_s3] sm:$0xff] %vm101_vm3, %v98_v5 }

</bundles_post_ra>
